<compile_context>
chip_gen: v7x
topology: tpu7x:2x2x1
jax: 0.10.0
libtpu: 0.0.40
codegen_flags: <defaults>
</compile_context>

<pallas_src>
import functools

import numpy as np
import jax
import jax.numpy as jnp
from jax import lax
from jax.experimental import pallas as pl
from jax.experimental.pallas import tpu as pltpu

LEAKY_SLOPE = 0.01
BN_EPS = 1e-5


def _round_up(v, m):
    return ((v + m - 1) // m) * m


@functools.lru_cache(maxsize=1)
def _vmem_limit_bytes():
    """Generation-aware scoped-VMEM request (~3/4 of physical, capped at 64 MiB)."""
    cap = 128 << 20
    try:
        cap = int(getattr(pltpu.get_tpu_info(), "vmem_capacity_bytes", cap))
    except Exception:
        pass
    return int(min(64 << 20, (cap * 3) // 4))   # v7x(64MiB phys)->48MiB, v5e/v6e(128MiB)->64MiB


def _compiler_params():
    return pltpu.CompilerParams(
        dimension_semantics=("parallel",),          # row tiles split across TCs on v7x megacore
        vmem_limit_bytes=_vmem_limit_bytes())


# ---------------- kernel bodies ----------------

def _tile_stats(h, sum_ref, m2_ref, rows_total, row_tile):
    """Per-row-tile partial sum and *centered* sum-of-squares over the valid rows only.

    Combined across tiles in the wrapper (Chan parallel-variance) -> exact global train-mode
    BatchNorm statistics regardless of row tiling / row padding.
    """
    i = pl.program_id(0)
    row0 = i * row_tile
    rows = lax.broadcasted_iota(jnp.int32, h.shape, 0) + row0
    valid = rows < rows_total
    count = jnp.maximum(
        jnp.minimum(jnp.int32(row_tile), jnp.int32(rows_total) - row0), 1
    ).astype(jnp.float32)
    hm = jnp.where(valid, h, 0.0)
    s = jnp.sum(hm, axis=0, keepdims=True)                       # (1, C)
    mean_t = s / count
    d = jnp.where(valid, h - mean_t, 0.0)
    sum_ref[...] = s.reshape(sum_ref.shape)
    m2_ref[...] = jnp.sum(d * d, axis=0, keepdims=True).reshape(m2_ref.shape)


def _bn_act(h_ref, scale_ref, shift_ref):
    """Pass 2 of the previous layer's BatchNorm (folded scale/shift) + LeakyReLU(0.01), bf16."""
    a = h_ref[...].astype(jnp.float32) * scale_ref[...] + shift_ref[...]
    a = jnp.where(a >= 0.0, a, LEAKY_SLOPE * a)
    return a.astype(jnp.bfloat16)


def _first_layer_kernel(x_ref, w_ref, h_ref, sum_ref, m2_ref, *, rows_total, row_tile):
    """Layer 0 (hidden): Linear + pass-1 BN stats. Input is the pre-concatenated [x|pos] tile."""
    h = jnp.dot(x_ref[...], w_ref[...], preferred_element_type=jnp.float32)
    h_ref[...] = h.astype(h_ref.dtype)                           # bf16, real channel width
    _tile_stats(h, sum_ref, m2_ref, rows_total, row_tile)


def _mid_layer_kernel(h_ref, scale_ref, shift_ref, w_ref, o_ref, sum_ref, m2_ref, *,
                      rows_total, row_tile):
    """Hidden layer i: BN(prev)+act (pass 2) + Linear + pass-1 BN stats of this layer."""
    a = _bn_act(h_ref, scale_ref, shift_ref)
    h = jnp.dot(a, w_ref[...], preferred_element_type=jnp.float32)
    o_ref[...] = h.astype(o_ref.dtype)
    _tile_stats(h, sum_ref, m2_ref, rows_total, row_tile)


def _last_layer_kernel(h_ref, scale_ref, shift_ref, w_ref, o_ref):
    """Plain last layer: BN(prev)+act (pass 2) + Linear; stores (tile, c_out) directly."""
    a = _bn_act(h_ref, scale_ref, shift_ref)
    o_ref[...] = jnp.dot(a, w_ref[...],
                         preferred_element_type=jnp.float32).astype(o_ref.dtype)


def _single_layer_kernel(x_ref, w_ref, o_ref):
    """Degenerate 1-layer MLP (plain last)."""
    o_ref[...] = jnp.dot(x_ref[...], w_ref[...],
                         preferred_element_type=jnp.float32).astype(o_ref.dtype)


# ---------------- BlockSpec helpers ----------------

def _row_spec(row_tile, c):
    return pl.BlockSpec((row_tile, c), lambda i: (i, 0))


def _resident_spec(shape):
    nd = len(shape)
    return pl.BlockSpec(shape, lambda i, _nd=nd: (0,) * _nd)    # constant -> stays resident


def _stats_spec(c):
    return pl.BlockSpec((1, 1, c), lambda i: (i, 0, 0))


# ---------------- forward wrapper ----------------

@functools.partial(jax.jit, static_argnames=("with_xyz", "out_dtype", "row_tile"))
def shared_mlp_forward(packed_params, x, pos, batch, point2curveidx=None, *,
                       with_xyz=True, out_dtype=jnp.float32, row_tile=512):
    # ---- resolve input features exactly like the torch module ----
    if x is None and with_xyz:
        feats = pos
    elif x is not None and with_xyz:
        feats = jnp.concatenate([x, pos], axis=1)
    elif x is not None:
        feats = x
    else:
        raise ValueError("SharedMLP.forward: x is None and with_xyz=False has no valid input.")

    n = feats.shape[0]
    n_layers = len(packed_params)
    assert n_layers >= 1

    # ---- row tiling: bf16-friendly tile (multiple of 16), N padded with zero rows ----
    row_tile = min(_round_up(int(row_tile), 16), _round_up(n, 16))
    n_pad = _round_up(n, row_tile)
    n_tiles = n_pad // row_tile
    # concat + bf16 cast + row pad fuse into one XLA pass; padded rows are zeros and are
    # excluded from all BN statistics below.
    x_in = jnp.pad(feats.astype(jnp.bfloat16), ((0, n_pad - n), (0, 0)))

    cp = _compiler_params()

    # static per-tile valid-row counts (for the Chan parallel-variance combine)
    t_idx = jnp.arange(n_tiles)
    counts = (jnp.minimum((t_idx + 1) * row_tile, n) - t_idx * row_tile)
    counts = counts.astype(jnp.float32).reshape(n_tiles, 1, 1)

    h = x_in
    scale = shift = None
    out = None
    for li in range(n_layers):                      # static unroll over layers
        p = packed_params[li]
        w = p["w"]                                  # bf16 (c_in, c_out), pre-packed
        c_in, c_out = w.shape
        is_last = li == n_layers - 1

        if is_last:
            out_shape = jax.ShapeDtypeStruct((n_pad, c_out), out_dtype)
            out_specs = _row_spec(row_tile, c_out)
        else:
            out_shape = (jax.ShapeDtypeStruct((n_pad, c_out), jnp.bfloat16),
                         jax.ShapeDtypeStruct((n_tiles, 1, c_out), jnp.float32),
                         jax.ShapeDtypeStruct((n_tiles, 1, c_out), jnp.float32))
            out_specs = (_row_spec(row_tile, c_out), _stats_spec(c_out), _stats_spec(c_out))

        if li == 0:
            kern = (_single_layer_kernel if is_last else
                    functools.partial(_first_layer_kernel, rows_total=n, row_tile=row_tile))
            in_specs = [_row_spec(row_tile, c_in), _resident_spec(w.shape)]
            args = (h, w)
        else:
            kern = (_last_layer_kernel if is_last else
                    functools.partial(_mid_layer_kernel, rows_total=n, row_tile=row_tile))
            in_specs = [_row_spec(row_tile, c_in), _resident_spec(scale.shape),
                        _resident_spec(shift.shape), _resident_spec(w.shape)]
            args = (h, scale, shift, w)

        flops = 2 * n_pad * c_in * c_out
        bytes_accessed = sum(int(a.size) * a.dtype.itemsize for a in args)
        if is_last:
            bytes_accessed += n_pad * c_out * np.dtype(out_dtype).itemsize
        else:
            bytes_accessed += n_pad * c_out * 2 + 2 * n_tiles * c_out * 4
        cost = pl.CostEstimate(flops=int(flops), transcendentals=0,
                               bytes_accessed=int(bytes_accessed))

        res = pl.pallas_call(
            kern,
            out_shape=out_shape,
            grid=(n_tiles,),
            in_specs=in_specs,
            out_specs=out_specs,
            compiler_params=cp,
            cost_estimate=cost,
        )(*args)

        if is_last:
            out = res
        else:
            h, sums, m2s = res
            # ---- combine per-tile partials -> global train-mode (biased) BN statistics ----
            mean = jnp.sum(sums, axis=0) / n                               # (1, c_out)
            mean_t = sums / counts
            m2 = jnp.sum(m2s, axis=0) + jnp.sum(counts * (mean_t - mean) ** 2, axis=0)
            var = m2 / n
            scale = p["gamma"] * lax.rsqrt(var + BN_EPS)                   # (1, c_out)
            shift = p["beta"] - mean * scale

    out = out[:n]                                   # drop padded rows (no-op when n % tile == 0)
    return out, pos, batch, point2curveidx


# ---------------- one-time parameter packing (no per-call pad/stack/cast) ----------------

def pack_shared_mlp_params(params):
    """bf16 weights for the MXU, f32 (1, C) BatchNorm affine. Call once and reuse."""
    packed = []
    for p in params:
        q = {"w": jnp.asarray(p["w"], jnp.bfloat16)}
        if "gamma" in p:
            q["gamma"] = jnp.asarray(p["gamma"], jnp.float32).reshape(1, -1)
            q["beta"] = jnp.asarray(p["beta"], jnp.float32).reshape(1, -1)
        packed.append(q)
    return tuple(packed)


# ---------------- parameter init (matches the spec: use_bias=False, plain_last=True) ----------------

def init_shared_mlp_params(key, dims):
    """dims = [c_in, h1, ..., c_out]; hidden layers carry BatchNorm affine params."""
    params = []
    n_layers = len(dims) - 1
    for li in range(n_layers):
        c_in, c_out = dims[li], dims[li + 1]
        key, kw, kg, kb = jax.random.split(key, 4)
        # weights stored as [C_in, C_out] (transpose of PyTorch Linear's [C_out, C_in])
        w = jax.random.normal(kw, (c_in, c_out), jnp.float32) * (2.0 / c_in) ** 0.5
        if li < n_layers - 1:
            gamma = 1.0 + 0.1 * jax.random.normal(kg, (1, c_out), jnp.float32)
            beta = 0.1 * jax.random.normal(kb, (1, c_out), jnp.float32)
            params.append({"w": w, "gamma": gamma, "beta": beta})
        else:
            params.append({"w": w})
    return params


# ---------------- pure-JAX f32 reference for verification ----------------

def _reference_forward(params, x, pos, with_xyz=True):
    if with_xyz:
        x = jnp.concatenate([x, pos], axis=1)
    n_layers = len(params)
    for li, p in enumerate(params):
        h = x @ p["w"]
        if li < n_layers - 1:
            mean = h.mean(0, keepdims=True)
            var = ((h - mean) ** 2).mean(0, keepdims=True)
            h = (h - mean) / jnp.sqrt(var + BN_EPS) * p["gamma"] + p["beta"]
            h = jnp.where(h >= 0, h, LEAKY_SLOPE * h)
        x = h
    return x


if __name__ == "__main__":
    key = jax.random.PRNGKey(0)
    k_x, k_pos, k_par = jax.random.split(key, 3)

    N = 64          # number of points
    C_FEAT = 13     # per-point feature channels
    dims = [C_FEAT + 3, 32, 32, 8]   # with_xyz concat adds 3 coordinate channels

    x = jax.random.normal(k_x, (N, C_FEAT), jnp.float32)
    pos = jax.random.normal(k_pos, (N, 3), jnp.float32)
    batch = jnp.zeros((N,), jnp.int32)

    params = init_shared_mlp_params(k_par, dims)
    packed = pack_shared_mlp_params(params)          # one-time packing, outside the hot path

    out_x, out_pos, out_batch, out_p2c = shared_mlp_forward(
        packed, x, pos, batch, None, with_xyz=True)
    jax.block_until_ready(out_x)

    ref = _reference_forward(params, x, pos, with_xyz=True)
    assert out_x.shape == (N, dims[-1])
    max_err = float(jnp.max(jnp.abs(out_x - ref)))
    # Matmuls and inter-layer activations run in bf16 (f32 accumulate) -> bf16-aware tolerance.
    assert jnp.allclose(out_x, ref, atol=5e-2, rtol=5e-2), f"max abs err {max_err}"

    print("KERNEL_OK")
</pallas_src>

<mosaic_0001>
module attributes {stable_mosaic.version = 11 : i64} {
  func.func @_first_layer_kernel(%arg0: i32, %arg1: memref<64x16xbf16, #tpu.memory_space<vmem>>, %arg2: memref<16x32xbf16, #tpu.memory_space<vmem>>, %arg3: memref<64x32xbf16, #tpu.memory_space<vmem>>, %arg4: memref<1x1x32xf32, #tpu.memory_space<vmem>>, %arg5: memref<1x1x32xf32, #tpu.memory_space<vmem>>) attributes {dimension_semantics = [#tpu.dimension_semantics<parallel>], iteration_bounds = array<i64: 1>, scalar_prefetch = 0 : i64, scratch_operands = 0 : i64, tpu.core_type = #tpu.core_type<tc>, window_params = [{transform_indices = @transform_0, window_bounds = array<i64: 64, 16>}, {pipeline_mode = #tpu.pipeline_mode<synchronous>, transform_indices = @transform_1, window_bounds = array<i64: 16, 32>}, {transform_indices = @transform_2, window_bounds = array<i64: 64, 32>}, {transform_indices = @transform_3, window_bounds = array<i64: 1, 1, 32>}, {transform_indices = @transform_4, window_bounds = array<i64: 1, 1, 32>}]} {
    %c0 = arith.constant 0 : index
    %c0_0 = arith.constant 0 : index
    %0 = vector.load %arg1[%c0, %c0_0] : memref<64x16xbf16, #tpu.memory_space<vmem>>, vector<64x16xbf16>
    %c0_1 = arith.constant 0 : index
    %c0_2 = arith.constant 0 : index
    %1 = vector.load %arg2[%c0_1, %c0_2] : memref<16x32xbf16, #tpu.memory_space<vmem>>, vector<16x32xbf16>
    %cst = arith.constant dense<0.000000e+00> : vector<64x32xf32>
    %2 = tpu.matmul %0, %1, %cst {dimension_numbers = #tpu.dot_dimension_numbers<[1], [0], [0], [1], [0, 0, 1, 1], [], []>} : vector<64x16xbf16>, vector<16x32xbf16>, vector<64x32xf32> -> vector<64x32xf32>
    %3 = arith.truncf %2 : vector<64x32xf32> to vector<64x32xbf16>
    %c0_3 = arith.constant 0 : index
    %c0_4 = arith.constant 0 : index
    %4 = vector.load %arg3[%c0_3, %c0_4] : memref<64x32xbf16, #tpu.memory_space<vmem>>, vector<64x32xbf16>
    tpu.vector_store %arg3[%c0_3, %c0_4], %3 {strides = array<i32>} : memref<64x32xbf16, #tpu.memory_space<vmem>>, vector<64x32xbf16>,
    %c64_i32 = arith.constant 64 : i32
    %5 = arith.muli %arg0, %c64_i32 : i32
    %6 = tpu.iota {dimensions = array<i32: 0>} : vector<64x32xi32>
    %7 = vector.broadcast %5 : i32 to vector<64x32xi32>
    %8 = arith.addi %6, %7 : vector<64x32xi32>
    %c64_i32_5 = arith.constant 64 : i32
    %9 = vector.broadcast %c64_i32_5 : i32 to vector<64x32xi32>
    %10 = arith.cmpi slt, %8, %9 : vector<64x32xi32>
    %c64_i32_6 = arith.constant 64 : i32
    %11 = arith.subi %c64_i32_6, %5 : i32
    %c64_i32_7 = arith.constant 64 : i32
    %12 = arith.minsi %c64_i32_7, %11 : i32
    %c1_i32 = arith.constant 1 : i32
    %13 = arith.maxsi %12, %c1_i32 : i32
    %14 = arith.sitofp %13 : i32 to f32
    %cst_8 = arith.constant 0.000000e+00 : f32
    %15 = vector.broadcast %cst_8 : f32 to vector<64x32xf32>
    %16 = arith.select %10, %2, %15 : vector<64x32xi1>, vector<64x32xf32>
    %cst_9 = arith.constant dense<0.000000e+00> : vector<32xf32>
    %17 = vector.multi_reduction <add>, %16, %cst_9 [0] : vector<64x32xf32> to vector<32xf32>
    %18 = vector.shape_cast %17 : vector<32xf32> to vector<1x32xf32>
    %19 = vector.broadcast %14 : f32 to vector<1x32xf32>
    %20 = arith.divf %18, %19 : vector<1x32xf32>
    %21 = vector.broadcast %20 : vector<1x32xf32> to vector<64x32xf32>
    %22 = arith.subf %2, %21 : vector<64x32xf32>
    %cst_10 = arith.constant 0.000000e+00 : f32
    %23 = vector.broadcast %cst_10 : f32 to vector<64x32xf32>
    %24 = arith.select %10, %22, %23 : vector<64x32xi1>, vector<64x32xf32>
    %25 = vector.shape_cast %18 : vector<1x32xf32> to vector<1x1x32xf32>
    %c0_11 = arith.constant 0 : index
    %c0_12 = arith.constant 0 : index
    %c0_13 = arith.constant 0 : index
    %26 = vector.load %arg4[%c0_11, %c0_12, %c0_13] : memref<1x1x32xf32, #tpu.memory_space<vmem>>, vector<1x1x32xf32>
    tpu.vector_store %arg4[%c0_11, %c0_12, %c0_13], %25 {strides = array<i32>} : memref<1x1x32xf32, #tpu.memory_space<vmem>>, vector<1x1x32xf32>,
    %27 = arith.mulf %24, %24 : vector<64x32xf32>
    %cst_14 = arith.constant dense<0.000000e+00> : vector<32xf32>
    %28 = vector.multi_reduction <add>, %27, %cst_14 [0] : vector<64x32xf32> to vector<32xf32>
    %29 = vector.shape_cast %28 : vector<32xf32> to vector<1x32xf32>
    %30 = vector.shape_cast %29 : vector<1x32xf32> to vector<1x1x32xf32>
    %c0_15 = arith.constant 0 : index
    %c0_16 = arith.constant 0 : index
    %c0_17 = arith.constant 0 : index
    %31 = vector.load %arg5[%c0_15, %c0_16, %c0_17] : memref<1x1x32xf32, #tpu.memory_space<vmem>>, vector<1x1x32xf32>
    tpu.vector_store %arg5[%c0_15, %c0_16, %c0_17], %30 {strides = array<i32>} : memref<1x1x32xf32, #tpu.memory_space<vmem>>, vector<1x1x32xf32>,
    return
  }
  func.func @transform_0(%arg0: i32) -> (i32, i32) {
    %c0_i32 = arith.constant 0 : i32
    %c0_i32_0 = arith.constant 0 : i32
    return %arg0, %c0_i32 : i32, i32
  }
  func.func @transform_1(%arg0: i32) -> (i32, i32) {
    %c0_i32 = arith.constant 0 : i32
    %c0_i32_0 = arith.constant 0 : i32
    %c0_i32_1 = arith.constant 0 : i32
    return %c0_i32, %c0_i32_0 : i32, i32
  }
  func.func @transform_2(%arg0: i32) -> (i32, i32) {
    %c0_i32 = arith.constant 0 : i32
    %c0_i32_0 = arith.constant 0 : i32
    return %arg0, %c0_i32 : i32, i32
  }
  func.func @transform_3(%arg0: i32) -> (i32, i32, i32) {
    %c0_i32 = arith.constant 0 : i32
    %c0_i32_0 = arith.constant 0 : i32
    %c0_i32_1 = arith.constant 0 : i32
    return %arg0, %c0_i32, %c0_i32_0 : i32, i32, i32
  }
  func.func @transform_4(%arg0: i32) -> (i32, i32, i32) {
    %c0_i32 = arith.constant 0 : i32
    %c0_i32_0 = arith.constant 0 : i32
    %c0_i32_1 = arith.constant 0 : i32
    return %arg0, %c0_i32, %c0_i32_0 : i32, i32, i32
  }
}

module attributes {stable_mosaic.version = 11 : i64} {
  func.func @_mid_layer_kernel(%arg0: i32, %arg1: memref<64x32xbf16, #tpu.memory_space<vmem>>, %arg2: memref<1x32xf32, #tpu.memory_space<vmem>>, %arg3: memref<1x32xf32, #tpu.memory_space<vmem>>, %arg4: memref<32x32xbf16, #tpu.memory_space<vmem>>, %arg5: memref<64x32xbf16, #tpu.memory_space<vmem>>, %arg6: memref<1x1x32xf32, #tpu.memory_space<vmem>>, %arg7: memref<1x1x32xf32, #tpu.memory_space<vmem>>) attributes {dimension_semantics = [#tpu.dimension_semantics<parallel>], iteration_bounds = array<i64: 1>, scalar_prefetch = 0 : i64, scratch_operands = 0 : i64, tpu.core_type = #tpu.core_type<tc>, window_params = [{transform_indices = @transform_0, window_bounds = array<i64: 64, 32>}, {pipeline_mode = #tpu.pipeline_mode<synchronous>, transform_indices = @transform_1, window_bounds = array<i64: 1, 32>}, {pipeline_mode = #tpu.pipeline_mode<synchronous>, transform_indices = @transform_2, window_bounds = array<i64: 1, 32>}, {pipeline_mode = #tpu.pipeline_mode<synchronous>, transform_indices = @transform_3, window_bounds = array<i64: 32, 32>}, {transform_indices = @transform_4, window_bounds = array<i64: 64, 32>}, {transform_indices = @transform_5, window_bounds = array<i64: 1, 1, 32>}, {transform_indices = @transform_6, window_bounds = array<i64: 1, 1, 32>}]} {
    %c0 = arith.constant 0 : index
    %c0_0 = arith.constant 0 : index
    %0 = vector.load %arg1[%c0, %c0_0] : memref<64x32xbf16, #tpu.memory_space<vmem>>, vector<64x32xbf16>
    %1 = arith.extf %0 : vector<64x32xbf16> to vector<64x32xf32>
    %c0_1 = arith.constant 0 : index
    %c0_2 = arith.constant 0 : index
    %2 = vector.load %arg2[%c0_1, %c0_2] : memref<1x32xf32, #tpu.memory_space<vmem>>, vector<1x32xf32>
    %3 = vector.broadcast %2 : vector<1x32xf32> to vector<64x32xf32>
    %4 = arith.mulf %1, %3 : vector<64x32xf32>
    %c0_3 = arith.constant 0 : index
    %c0_4 = arith.constant 0 : index
    %5 = vector.load %arg3[%c0_3, %c0_4] : memref<1x32xf32, #tpu.memory_space<vmem>>, vector<1x32xf32>
    %6 = vector.broadcast %5 : vector<1x32xf32> to vector<64x32xf32>
    %7 = arith.addf %4, %6 : vector<64x32xf32>
    %cst = arith.constant 0.000000e+00 : f32
    %8 = vector.broadcast %cst : f32 to vector<64x32xf32>
    %9 = arith.cmpf oge, %7, %8 : vector<64x32xf32>
    %cst_5 = arith.constant 0.00999999977 : f32
    %10 = vector.broadcast %cst_5 : f32 to vector<64x32xf32>
    %11 = arith.mulf %10, %7 : vector<64x32xf32>
    %12 = arith.select %9, %7, %11 : vector<64x32xi1>, vector<64x32xf32>
    %13 = arith.truncf %12 : vector<64x32xf32> to vector<64x32xbf16>
    %c0_6 = arith.constant 0 : index
    %c0_7 = arith.constant 0 : index
    %14 = vector.load %arg4[%c0_6, %c0_7] : memref<32x32xbf16, #tpu.memory_space<vmem>>, vector<32x32xbf16>
    %cst_8 = arith.constant dense<0.000000e+00> : vector<64x32xf32>
    %15 = tpu.matmul %13, %14, %cst_8 {dimension_numbers = #tpu.dot_dimension_numbers<[1], [0], [0], [1], [0, 0, 1, 1], [], []>} : vector<64x32xbf16>, vector<32x32xbf16>, vector<64x32xf32> -> vector<64x32xf32>
    %16 = arith.truncf %15 : vector<64x32xf32> to vector<64x32xbf16>
    %c0_9 = arith.constant 0 : index
    %c0_10 = arith.constant 0 : index
    %17 = vector.load %arg5[%c0_9, %c0_10] : memref<64x32xbf16, #tpu.memory_space<vmem>>, vector<64x32xbf16>
    tpu.vector_store %arg5[%c0_9, %c0_10], %16 {strides = array<i32>} : memref<64x32xbf16, #tpu.memory_space<vmem>>, vector<64x32xbf16>,
    %c64_i32 = arith.constant 64 : i32
    %18 = arith.muli %arg0, %c64_i32 : i32
    %19 = tpu.iota {dimensions = array<i32: 0>} : vector<64x32xi32>
    %20 = vector.broadcast %18 : i32 to vector<64x32xi32>
    %21 = arith.addi %19, %20 : vector<64x32xi32>
    %c64_i32_11 = arith.constant 64 : i32
    %22 = vector.broadcast %c64_i32_11 : i32 to vector<64x32xi32>
    %23 = arith.cmpi slt, %21, %22 : vector<64x32xi32>
    %c64_i32_12 = arith.constant 64 : i32
    %24 = arith.subi %c64_i32_12, %18 : i32
    %c64_i32_13 = arith.constant 64 : i32
    %25 = arith.minsi %c64_i32_13, %24 : i32
    %c1_i32 = arith.constant 1 : i32
    %26 = arith.maxsi %25, %c1_i32 : i32
    %27 = arith.sitofp %26 : i32 to f32
    %cst_14 = arith.constant 0.000000e+00 : f32
    %28 = vector.broadcast %cst_14 : f32 to vector<64x32xf32>
    %29 = arith.select %23, %15, %28 : vector<64x32xi1>, vector<64x32xf32>
    %cst_15 = arith.constant dense<0.000000e+00> : vector<32xf32>
    %30 = vector.multi_reduction <add>, %29, %cst_15 [0] : vector<64x32xf32> to vector<32xf32>
    %31 = vector.shape_cast %30 : vector<32xf32> to vector<1x32xf32>
    %32 = vector.broadcast %27 : f32 to vector<1x32xf32>
    %33 = arith.divf %31, %32 : vector<1x32xf32>
    %34 = vector.broadcast %33 : vector<1x32xf32> to vector<64x32xf32>
    %35 = arith.subf %15, %34 : vector<64x32xf32>
    %cst_16 = arith.constant 0.000000e+00 : f32
    %36 = vector.broadcast %cst_16 : f32 to vector<64x32xf32>
    %37 = arith.select %23, %35, %36 : vector<64x32xi1>, vector<64x32xf32>
    %38 = vector.shape_cast %31 : vector<1x32xf32> to vector<1x1x32xf32>
    %c0_17 = arith.constant 0 : index
    %c0_18 = arith.constant 0 : index
    %c0_19 = arith.constant 0 : index
    %39 = vector.load %arg6[%c0_17, %c0_18, %c0_19] : memref<1x1x32xf32, #tpu.memory_space<vmem>>, vector<1x1x32xf32>
    tpu.vector_store %arg6[%c0_17, %c0_18, %c0_19], %38 {strides = array<i32>} : memref<1x1x32xf32, #tpu.memory_space<vmem>>, vector<1x1x32xf32>,
    %40 = arith.mulf %37, %37 : vector<64x32xf32>
    %cst_20 = arith.constant dense<0.000000e+00> : vector<32xf32>
    %41 = vector.multi_reduction <add>, %40, %cst_20 [0] : vector<64x32xf32> to vector<32xf32>
    %42 = vector.shape_cast %41 : vector<32xf32> to vector<1x32xf32>
    %43 = vector.shape_cast %42 : vector<1x32xf32> to vector<1x1x32xf32>
    %c0_21 = arith.constant 0 : index
    %c0_22 = arith.constant 0 : index
    %c0_23 = arith.constant 0 : index
    %44 = vector.load %arg7[%c0_21, %c0_22, %c0_23] : memref<1x1x32xf32, #tpu.memory_space<vmem>>, vector<1x1x32xf32>
    tpu.vector_store %arg7[%c0_21, %c0_22, %c0_23], %43 {strides = array<i32>} : memref<1x1x32xf32, #tpu.memory_space<vmem>>, vector<1x1x32xf32>,
    return
  }
  func.func @transform_0(%arg0: i32) -> (i32, i32) {
    %c0_i32 = arith.constant 0 : i32
    %c0_i32_0 = arith.constant 0 : i32
    return %arg0, %c0_i32 : i32, i32
  }
  func.func @transform_1(%arg0: i32) -> (i32, i32) {
    %c0_i32 = arith.constant 0 : i32
    %c0_i32_0 = arith.constant 0 : i32
    %c0_i32_1 = arith.constant 0 : i32
    return %c0_i32, %c0_i32_0 : i32, i32
  }
  func.func @transform_2(%arg0: i32) -> (i32, i32) {
    %c0_i32 = arith.constant 0 : i32
    %c0_i32_0 = arith.constant 0 : i32
    %c0_i32_1 = arith.constant 0 : i32
    return %c0_i32, %c0_i32_0 : i32, i32
  }
  func.func @transform_3(%arg0: i32) -> (i32, i32) {
    %c0_i32 = arith.constant 0 : i32
    %c0_i32_0 = arith.constant 0 : i32
    %c0_i32_1 = arith.constant 0 : i32
    return %c0_i32, %c0_i32_0 : i32, i32
  }
  func.func @transform_4(%arg0: i32) -> (i32, i32) {
    %c0_i32 = arith.constant 0 : i32
    %c0_i32_0 = arith.constant 0 : i32
    return %arg0, %c0_i32 : i32, i32
  }
  func.func @transform_5(%arg0: i32) -> (i32, i32, i32) {
    %c0_i32 = arith.constant 0 : i32
    %c0_i32_0 = arith.constant 0 : i32
    %c0_i32_1 = arith.constant 0 : i32
    return %arg0, %c0_i32, %c0_i32_0 : i32, i32, i32
  }
  func.func @transform_6(%arg0: i32) -> (i32, i32, i32) {
    %c0_i32 = arith.constant 0 : i32
    %c0_i32_0 = arith.constant 0 : i32
    %c0_i32_1 = arith.constant 0 : i32
    return %arg0, %c0_i32, %c0_i32_0 : i32, i32, i32
  }
}

module attributes {stable_mosaic.version = 11 : i64} {
  func.func @_last_layer_kernel(%arg0: i32, %arg1: memref<64x32xbf16, #tpu.memory_space<vmem>>, %arg2: memref<1x32xf32, #tpu.memory_space<vmem>>, %arg3: memref<1x32xf32, #tpu.memory_space<vmem>>, %arg4: memref<32x8xbf16, #tpu.memory_space<vmem>>, %arg5: memref<64x8xf32, #tpu.memory_space<vmem>>) attributes {dimension_semantics = [#tpu.dimension_semantics<parallel>], iteration_bounds = array<i64: 1>, scalar_prefetch = 0 : i64, scratch_operands = 0 : i64, tpu.core_type = #tpu.core_type<tc>, window_params = [{transform_indices = @transform_0, window_bounds = array<i64: 64, 32>}, {pipeline_mode = #tpu.pipeline_mode<synchronous>, transform_indices = @transform_1, window_bounds = array<i64: 1, 32>}, {pipeline_mode = #tpu.pipeline_mode<synchronous>, transform_indices = @transform_2, window_bounds = array<i64: 1, 32>}, {pipeline_mode = #tpu.pipeline_mode<synchronous>, transform_indices = @transform_3, window_bounds = array<i64: 32, 8>}, {transform_indices = @transform_4, window_bounds = array<i64: 64, 8>}]} {
    %c0 = arith.constant 0 : index
    %c0_0 = arith.constant 0 : index
    %0 = vector.load %arg1[%c0, %c0_0] : memref<64x32xbf16, #tpu.memory_space<vmem>>, vector<64x32xbf16>
    %1 = arith.extf %0 : vector<64x32xbf16> to vector<64x32xf32>
    %c0_1 = arith.constant 0 : index
    %c0_2 = arith.constant 0 : index
    %2 = vector.load %arg2[%c0_1, %c0_2] : memref<1x32xf32, #tpu.memory_space<vmem>>, vector<1x32xf32>
    %3 = vector.broadcast %2 : vector<1x32xf32> to vector<64x32xf32>
    %4 = arith.mulf %1, %3 : vector<64x32xf32>
    %c0_3 = arith.constant 0 : index
    %c0_4 = arith.constant 0 : index
    %5 = vector.load %arg3[%c0_3, %c0_4] : memref<1x32xf32, #tpu.memory_space<vmem>>, vector<1x32xf32>
    %6 = vector.broadcast %5 : vector<1x32xf32> to vector<64x32xf32>
    %7 = arith.addf %4, %6 : vector<64x32xf32>
    %cst = arith.constant 0.000000e+00 : f32
    %8 = vector.broadcast %cst : f32 to vector<64x32xf32>
    %9 = arith.cmpf oge, %7, %8 : vector<64x32xf32>
    %cst_5 = arith.constant 0.00999999977 : f32
    %10 = vector.broadcast %cst_5 : f32 to vector<64x32xf32>
    %11 = arith.mulf %10, %7 : vector<64x32xf32>
    %12 = arith.select %9, %7, %11 : vector<64x32xi1>, vector<64x32xf32>
    %13 = arith.truncf %12 : vector<64x32xf32> to vector<64x32xbf16>
    %c0_6 = arith.constant 0 : index
    %c0_7 = arith.constant 0 : index
    %14 = vector.load %arg4[%c0_6, %c0_7] : memref<32x8xbf16, #tpu.memory_space<vmem>>, vector<32x8xbf16>
    %cst_8 = arith.constant dense<0.000000e+00> : vector<64x8xf32>
    %15 = tpu.matmul %13, %14, %cst_8 {dimension_numbers = #tpu.dot_dimension_numbers<[1], [0], [0], [1], [0, 0, 1, 1], [], []>} : vector<64x32xbf16>, vector<32x8xbf16>, vector<64x8xf32> -> vector<64x8xf32>
    %c0_9 = arith.constant 0 : index
    %c0_10 = arith.constant 0 : index
    %16 = vector.load %arg5[%c0_9, %c0_10] : memref<64x8xf32, #tpu.memory_space<vmem>>, vector<64x8xf32>
    tpu.vector_store %arg5[%c0_9, %c0_10], %15 {strides = array<i32>} : memref<64x8xf32, #tpu.memory_space<vmem>>, vector<64x8xf32>,
    return
  }
  func.func @transform_0(%arg0: i32) -> (i32, i32) {
    %c0_i32 = arith.constant 0 : i32
    %c0_i32_0 = arith.constant 0 : i32
    return %arg0, %c0_i32 : i32, i32
  }
  func.func @transform_1(%arg0: i32) -> (i32, i32) {
    %c0_i32 = arith.constant 0 : i32
    %c0_i32_0 = arith.constant 0 : i32
    %c0_i32_1 = arith.constant 0 : i32
    return %c0_i32, %c0_i32_0 : i32, i32
  }
  func.func @transform_2(%arg0: i32) -> (i32, i32) {
    %c0_i32 = arith.constant 0 : i32
    %c0_i32_0 = arith.constant 0 : i32
    %c0_i32_1 = arith.constant 0 : i32
    return %c0_i32, %c0_i32_0 : i32, i32
  }
  func.func @transform_3(%arg0: i32) -> (i32, i32) {
    %c0_i32 = arith.constant 0 : i32
    %c0_i32_0 = arith.constant 0 : i32
    %c0_i32_1 = arith.constant 0 : i32
    return %c0_i32, %c0_i32_0 : i32, i32
  }
  func.func @transform_4(%arg0: i32) -> (i32, i32) {
    %c0_i32 = arith.constant 0 : i32
    %c0_i32_0 = arith.constant 0 : i32
    return %arg0, %c0_i32 : i32, i32
  }
}

</mosaic_0001>

<bundles_post_ra>
// kernel: shared_mlp_forward.3
= control target key start
LH: loop header
LB: loop body
LE: loop exit
PB: predicated region body
PF: predicated region fallthrough
CT: control target
= control target key end

     0   :  { %10 = vsyncpa [#allocation3], 0  ;;  %s706_s0 = inlined_call_operand.hbm [shape: bf16[64,16], index: 0, kind: input, shape index: {}]   ;;  %s707_s1 = inlined_call_operand.hbm [shape: bf16[16,32], index: 1, kind: input, shape index: {}]   ;;  %s708_s2 = inlined_call_operand.hbm [shape: bf16[64,32], index: 2, kind: output, shape index: {0}]   ;;  %s709_s3 = inlined_call_operand.hbm [shape: f32[1,1,32], index: 3, kind: output, shape index: {1}]   ;;  %s710_s4 = inlined_call_operand.hbm [shape: f32[1,1,32], index: 4, kind: output, shape index: {2}]  }
   0x1   :  { %11 = vsyncpa [#allocation6], 0 }
   0x2   :  { %12 = vsyncpa [#allocation4], 0 }
   0x3   :  { %13 = vsyncpa [#allocation9], 0  ;;  %s531_s15 = smov [#allocation2]   ;;  %s413_s19 = scalar_lea.hbm %s706_s0, 512 }
   0x4   :  { %s19_s16 = sshll.u32 %s531_s15, 4  ;;  %p414_p0 = scmp.ne.s32.totalorder %s706_s0, %s413_s19  ;;  %s20_s16 = int_to_ptr.vmem [resolvable:$true] %s19_s16 }
   0x5   :  { %p417_p1 = scmp.lt.u32.totalorder %s413_s19, %s706_s0 }
   0x7   :  { %p419_p2 = pnand %p417_p1, %p414_p0 }
   0x9   :  { %422 = shalt.err (!%p419_p2)
}
   0xa   :  { %s423_s24 = scalar_lea.vmem %s20_s16, 512  ;;  %p428_p4 = scmp.lt.s32.totalorder %s20_s16, %s20_s16 }
   0xb   :  { %p424_p3 = scmp.ne.s32.totalorder %s20_s16, %s423_s24  ;;  %p429_p5 = scmp.lt.s32.totalorder %s423_s24, %s423_s24 }
   0xd   :  { %p430_p6 = por %p429_p5, %p428_p4 }
   0xf   :  { %p431_p7 = pnand %p430_p6, %p424_p3 }
  0x11   :  { %434 = shalt.err (!%p431_p7)
}
  0x12   :  { %s532_s25 = smov 64   ;;  %s533_s26 = smov 4  }
  0x13   :  { %25 = dma.hbm_to_vmem [thread:$0]  %s706_s0, 512, %s20_s16, [#allocation3], %s532_s25, %s532_s25, %s533_s26  }
  0x14   :  { %s534_s29 = smov [#allocation5]   ;;  %s435_s7 = scalar_lea.hbm %s707_s1, 128 }
  0x15   :  { %s31_s30 = sshll.u32 %s534_s29, 4  ;;  %p436_p8 = scmp.ne.s32.totalorder %s707_s1, %s435_s7  ;;  %s32_s30 = int_to_ptr.vmem [resolvable:$true] %s31_s30 }
  0x16   :  { %p439_p9 = scmp.lt.u32.totalorder %s435_s7, %s707_s1 }
  0x18   :  { %p441_p10 = pnand %p439_p9, %p436_p8 }
  0x1a   :  { %444 = shalt.err (!%p441_p10)
}
  0x1b   :  { %s445_s12 = scalar_lea.vmem %s32_s30, 128  ;;  %p450_p12 = scmp.lt.s32.totalorder %s32_s30, %s32_s30 }
  0x1c   :  { %p446_p11 = scmp.ne.s32.totalorder %s32_s30, %s445_s12  ;;  %p451_p13 = scmp.lt.s32.totalorder %s445_s12, %s445_s12 }
  0x1e   :  { %p452_p0 = por %p451_p13, %p450_p12 }
  0x20   :  { %p453_p1 = pnand %p452_p0, %p446_p11 }
  0x22   :  { %456 = shalt.err (!%p453_p1)
}
  0x23   :  { %37 = dma.hbm_to_vmem [thread:$0]  %s707_s1, 128, %s32_s30, [#allocation6], %s532_s25, %s532_s25, %s533_s26  }
  0x24   :  { %523 = dma.done.wait [#allocation3], 512  }
  0x25   :  { %524 = vsyncadd [#allocation3], 4294966784 }
  0x26   :  { %525 = dma.done.wait [#allocation6], 128  }
  0x27   :  { %526 = vsyncadd [#allocation6], 4294967168  ;;  %v408_v0 = vld [vmem:[#allocation5] sm:$0xff]   ;;  %vm81_vm0 = vcmask 130048   ;;  %v410_v2 = vld [vmem:[#allocation2 + $0x8] sm:$0xff]   ;;  %vm191_vm1 = vcmask 257024  }
  0x28   :  { %v409_v1 = vld [vmem:[#allocation2] sm:$0xff]   ;;  %389 = vmatprep.subr.bf16.mxu0 %v408_v0  ;;  %399 = vmatprep.subr.bf16.mxu1 %v408_v0  ;;  %v411_v3 = vld [vmem:[#allocation2 + $0x10] sm:$0xff]   ;;  %v412_v4 = vld [vmem:[#allocation2 + $0x18] sm:$0xff]   ;;  %vm241_vm2 = vcmask 261120   ;;  %s535_s1 = smov [#allocation7]  }
  0x29   :  { %390 = vmatpush3.bf16.msra.mxu0 %v408_v0  ;;  %391 = vmatprep.mubr.msk.bf16.mxu0 %vm81_vm0, %v409_v1  ;;  %s319_s14 = sshll.u32 %s535_s1, 4  ;;  %s320_s14 = int_to_ptr.vmem [resolvable:$true] %s319_s14 }
  0x2a   :  { %400 = vmatpush3.bf16.msra.mxu1 %v408_v0  ;;  %395 = vmatprep.mubr.msk.bf16.mxu1 %vm81_vm0, %v411_v3  ;;  %s457_s15 = scalar_lea.vmem %s320_s14, 512  ;;  %p462_p3 = scmp.lt.s32.totalorder %s320_s14, %s320_s14 }
  0x2b   :  { %p458_p2 = scmp.ne.s32.totalorder %s320_s14, %s457_s15  ;;  %p463_p4 = scmp.lt.s32.totalorder %s457_s15, %s457_s15 }
  0x2c   :  { %392 = vmatmul.mubr.msk.bf16.vlgmr.msra.gmra.mrb[0].mxu0 %vm81_vm0, %v410_v2 }
  0x2d   :  { %396 = vmatmul.mubr.msk.bf16.vlgmr.msra.gmra.mrb[0].mxu1 %vm81_vm0, %v412_v4  ;;  %p464_p5 = por %p463_p4, %p462_p3 }
  0x2f   :  { %p465_p6 = pnand %p464_p5, %p458_p2 }
  0xff   :  { %v593_v5 = vpop.f32.mrb[0].mxu0 }
 0x100   :  { %v378_v6 = vpack.c.bf16 %v593_v5, %v593_v5  ;;  %v597_v7 = vpop.f32.mrb[1].mxu0  ;;  %v599_v8 = vpop.f32.mrb[0].mxu1  ;;  %v245_v24 = vsel %vm241_vm2, %v593_v5, 0.0 }
 0x101   :  { %v376_v9 = vpack.c.bf16 %v597_v7, %v597_v7  ;;  %v603_v10 = vpop.f32.mrb[2].mxu0  ;;  %v382_v11 = vpack.c.bf16 %v599_v8, %v599_v8  ;;  %v607_v12 = vpop.f32.mrb[1].mxu1  ;;  %v242_v17 = vsel %vm241_vm2, %v597_v7, 0.0 }
 0x102   :  { %194 = vst.msk [vmem:[#allocation7 + $0x8] sm:$0xf] %vm191_vm1, %v378_v6  ;;  %v379_v13 = vpack.c.bf16 %v603_v10, %v603_v10  ;;  %v612_v14 = vpop.f32.mrb[3].mxu0  ;;  %v380_v15 = vpack.c.bf16 %v607_v12, %v607_v12  ;;  %v616_v16 = vpop.f32.mrb[2].mxu1  ;;  %v247_v26 = vsel %vm241_vm2, %v603_v10, 0.0  ;;  %v249_v27 = vsel %vm241_vm2, %v607_v12, 0.0 }
 0x103   :  { %192 = vst.msk [vmem:[#allocation7] sm:$0xf] %vm191_vm1, %v376_v9  ;;  %v377_v18 = vpack.c.bf16 %v612_v14, %v612_v14  ;;  %v243_v19 = vsel %vm241_vm2, %v612_v14, 0.0  ;;  %198 = vst.msk [vmem:[#allocation7 + $0x18] sm:$0xf] %vm191_vm1, %v382_v11  ;;  %v383_v20 = vpack.c.bf16 %v616_v16, %v616_v16  ;;  %v628_v21 = vpop.f32.mrb[3].mxu1 }
 0x104   :  { %195 = vst.msk [vmem:[#allocation7 + $0xc] sm:$0xf] %vm191_vm1, %v379_v13  ;;  %v244_v22 = vadd.f32 %v243_v19, %v242_v17  ;;  %196 = vst.msk [vmem:[#allocation7 + $0x10] sm:$0xf] %vm191_vm1, %v380_v15  ;;  %v381_v23 = vpack.c.bf16 %v628_v21, %v628_v21 }
 0x105   :  { %193 = vst.msk [vmem:[#allocation7 + $0x4] sm:$0xf] %vm191_vm1, %v377_v18  ;;  %199 = vst.msk [vmem:[#allocation7 + $0x1c] sm:$0xf] %vm191_vm1, %v383_v20 }
 0x106   :  { %v246_v25 = vadd.f32 %v245_v24, %v244_v22  ;;  %197 = vst.msk [vmem:[#allocation7 + $0x14] sm:$0xf] %vm191_vm1, %v381_v23 }
 0x107   :  { %468 = shalt.err (!%p465_p6)
}
 0x108   :  { %s469_s18 = scalar_lea.hbm %s708_s2, 512 }
 0x109   :  { %p470_p7 = scmp.ne.s32.totalorder %s708_s2, %s469_s18  ;;  %p473_p8 = scmp.lt.u32.totalorder %s469_s18, %s708_s2 }
 0x10b   :  { %p475_p9 = pnand %p473_p8, %p470_p7 }
 0x10d   :  { %478 = shalt.err (!%p475_p9)
}
 0x10e   :  { %325 = dma.vmem_to_hbm [thread:$0]  %s320_s14, 512, %s708_s2, [#allocation4], %s532_s25, %s532_s25, %s533_s26   ;;  %v248_v28 = vadd.f32 %v247_v26, %v246_v25  ;;  %v251_v30 = vsel %vm241_vm2, %v628_v21, 0.0  ;;  %v253_v32 = vsel %vm241_vm2, %v599_v8, 0.0  ;;  %v255_v34 = vsel %vm241_vm2, %v616_v16, 0.0 }
 0x10f   :  { %s536_s27 = smov [#allocation8]   ;;  %vm282_vm3 = vcmask 253952  }
 0x110   :  { %v250_v29 = vadd.f32 %v249_v27, %v248_v28  ;;  %s332_s2 = sshll.u32 %s536_s27, 4  ;;  %s333_s2 = int_to_ptr.vmem [resolvable:$true] %s332_s2 }
 0x111   :  { %s479_s25 = scalar_lea.vmem %s333_s2, 16  ;;  %s483_s26 = scalar_lea.vmem %s333_s2, 32 }
 0x112   :  { %v252_v31 = vadd.f32 %v251_v30, %v250_v29  ;;  %p480_p10 = scmp.ne.s32.totalorder %s333_s2, %s479_s25  ;;  %p484_p11 = scmp.lt.s32.totalorder %s333_s2, %s333_s2 }
 0x113   :  { %p485_p12 = scmp.lt.s32.totalorder %s483_s26, %s479_s25 }
 0x114   :  { %v254_v33 = vadd.f32 %v253_v32, %v252_v31 }
 0x115   :  { %p486_p13 = por %p485_p12, %p484_p11 }
 0x116   :  { %v256_v35 = vadd.f32 %v255_v34, %v254_v33 }
 0x117   :  { %p487_p0 = pnand %p486_p13, %p480_p10 }
 0x118   :  { %v257_v36 = vrot.slane %v256_v35, 4 }
 0x11a   :  { %v258_v37 = vadd.f32 %v257_v36, %v256_v35 }
 0x11c   :  { %v259_v38 = vrot.slane %v258_v37, 2 }
 0x11e   :  { %v260_v39 = vadd.f32 %v259_v38, %v258_v37 }
 0x120   :  { %v261_v40 = vrot.slane %v260_v39, 1 }
 0x122   :  { %v262_v41 = vadd.f32 %v261_v40, %v260_v39 }
 0x124   :  { %v265_v42 = vmul.f32 0.015625, %v262_v41  ;;  %283 = vst.msk [vmem:[#allocation8] sm:$0x1] %vm282_vm3, %v262_v41 }
 0x125   :  { %490 = shalt.err (!%p487_p0)
}
 0x126   :  { %s491_s30 = scalar_lea.hbm %s709_s3, 16 }
 0x127   :  { %p492_p1 = scmp.ne.s32.totalorder %s709_s3, %s491_s30  ;;  %p495_p2 = scmp.lt.u32.totalorder %s491_s30, %s709_s3 }
 0x129   :  { %p497_p3 = pnand %p495_p2, %p492_p1 }
 0x12b   :  { %500 = shalt.err (!%p497_p3)
}
 0x12c   :  { %335 = dma.vmem_to_hbm [thread:$0]  %s333_s2, 16, %s709_s3, [#allocation9]   ;;  %v266_v43 = vsub.f32 %v597_v7, %v265_v42  ;;  %v267_v44 = vsub.f32 %v612_v14, %v265_v42  ;;  %v268_v45 = vsub.f32 %v593_v5, %v265_v42  ;;  %v269_v46 = vsub.f32 %v603_v10, %v265_v42 }
 0x12d   :  { %v270_v47 = vsub.f32 %v607_v12, %v265_v42  ;;  %v271_v48 = vsub.f32 %v628_v21, %v265_v42  ;;  %v272_v49 = vsub.f32 %v599_v8, %v265_v42  ;;  %v273_v50 = vsub.f32 %v616_v16, %v265_v42  ;;  %s537_s3 = smov [#allocation10]  }
 0x12e   :  { %v284_v51 = vmul.f32 %v266_v43, %v266_v43  ;;  %v285_v52 = vmul.f32 %v267_v44, %v267_v44  ;;  %v286_v53 = vmul.f32 %v268_v45, %v268_v45  ;;  %v287_v54 = vmul.f32 %v269_v46, %v269_v46  ;;  %s342_s11 = sshll.u32 %s537_s3, 4  ;;  %s343_s11 = int_to_ptr.vmem [resolvable:$true] %s342_s11 }
 0x12f   :  { %v288_v58 = vmul.f32 %v270_v47, %v270_v47  ;;  %v289_v61 = vmul.f32 %v271_v48, %v271_v48  ;;  %v290_v0 = vmul.f32 %v272_v49, %v272_v49  ;;  %v291_v3 = vmul.f32 %v273_v50, %v273_v50  ;;  %s501_s12 = scalar_lea.vmem %s343_s11, 16  ;;  %s505_s0 = scalar_lea.vmem %s343_s11, 32 }
 0x130   :  { %v292_v55 = vsel %vm241_vm2, %v284_v51, 0.0  ;;  %v293_v56 = vsel %vm241_vm2, %v285_v52, 0.0  ;;  %v295_v59 = vsel %vm241_vm2, %v286_v53, 0.0  ;;  %v297_v62 = vsel %vm241_vm2, %v287_v54, 0.0  ;;  %p502_p4 = scmp.ne.s32.totalorder %s343_s11, %s501_s12  ;;  %p506_p5 = scmp.lt.s32.totalorder %s343_s11, %s343_s11 }
 0x131   :  { %v294_v57 = vadd.f32 %v293_v56, %v292_v55  ;;  %v299_v1 = vsel %vm241_vm2, %v288_v58, 0.0  ;;  %v301_v4 = vsel %vm241_vm2, %v289_v61, 0.0  ;;  %v303_v6 = vsel %vm241_vm2, %v290_v0, 0.0  ;;  %p507_p6 = scmp.lt.s32.totalorder %s505_s0, %s501_s12 }
 0x132   :  { %v305_v8 = vsel %vm241_vm2, %v291_v3, 0.0 }
 0x133   :  { %v296_v60 = vadd.f32 %v295_v59, %v294_v57  ;;  %p508_p7 = por %p507_p6, %p506_p5 }
 0x135   :  { %v298_v63 = vadd.f32 %v297_v62, %v296_v60  ;;  %p509_p8 = pnand %p508_p7, %p502_p4 }
 0x137   :  { %v300_v2 = vadd.f32 %v299_v1, %v298_v63 }
 0x139   :  { %v302_v5 = vadd.f32 %v301_v4, %v300_v2 }
 0x13b   :  { %v304_v7 = vadd.f32 %v303_v6, %v302_v5 }
 0x13d   :  { %v306_v9 = vadd.f32 %v305_v8, %v304_v7 }
 0x13f   :  { %v307_v10 = vrot.slane %v306_v9, 4 }
 0x141   :  { %v308_v11 = vadd.f32 %v307_v10, %v306_v9 }
 0x143   :  { %v309_v12 = vrot.slane %v308_v11, 2 }
 0x145   :  { %v310_v13 = vadd.f32 %v309_v12, %v308_v11 }
 0x147   :  { %v311_v14 = vrot.slane %v310_v13, 1 }
 0x149   :  { %v312_v15 = vadd.f32 %v311_v14, %v310_v13 }
 0x14b   :  { %313 = vst.msk [vmem:[#allocation10] sm:$0x1] %vm282_vm3, %v312_v15 }
 0x14c   :  { %512 = shalt.err (!%p509_p8)
}
 0x14d   :  { %s513_s14 = scalar_lea.hbm %s710_s4, 16 }
 0x14e   :  { %p514_p9 = scmp.ne.s32.totalorder %s710_s4, %s513_s14  ;;  %p517_p10 = scmp.lt.u32.totalorder %s513_s14, %s710_s4 }
 0x150   :  { %p519_p11 = pnand %p517_p10, %p514_p9 }
 0x152   :  { %522 = shalt.err (!%p519_p11)
}
 0x153   :  { %345 = dma.vmem_to_hbm [thread:$0]  %s343_s11, 16, %s710_s4, [#allocation9]  }
 0x154   :  { %527 = dma.done.wait [#allocation4], 512  }
 0x155   :  { %528 = vsyncadd [#allocation4], 4294966784 }
 0x156   :  { %529 = dma.done.wait [#allocation9], 32  }
 0x157   :  { %530 = vsyncadd [#allocation9], 4294967264 }
 0x158   :  { %355 = vsyncpa [#allocation3], 1 }
 0x159   :  { %356 = vsyncpa [#allocation6], 1 }
 0x15a   :  { %357 = vsyncpa [#allocation4], 1 }
 0x15b   :  { %358 = vsyncpa [#allocation9], 1 }

// kernel: shared_mlp_forward.4
= control target key start
LH: loop header
LB: loop body
LE: loop exit
PB: predicated region body
PF: predicated region fallthrough
CT: control target
= control target key end

     0   :  { %12 = vsyncpa [#allocation3], 0  ;;  %s899_s0 = inlined_call_operand.hbm [shape: bf16[64,32], index: 0, kind: input, shape index: {}]   ;;  %s900_s1 = inlined_call_operand.hbm [shape: f32[1,32], index: 1, kind: input, shape index: {}]   ;;  %s901_s2 = inlined_call_operand.hbm [shape: f32[1,32], index: 2, kind: input, shape index: {}]   ;;  %s902_s3 = inlined_call_operand.hbm [shape: bf16[32,32], index: 3, kind: input, shape index: {}]   ;;  %s903_s4 = inlined_call_operand.hbm [shape: bf16[64,32], index: 4, kind: output, shape index: {0}]   ;;  %s904_s5 = inlined_call_operand.hbm [shape: f32[1,1,32], index: 5, kind: output, shape index: {1}]   ;;  %s905_s6 = inlined_call_operand.hbm [shape: f32[1,1,32], index: 6, kind: output, shape index: {2}]  }
   0x1   :  { %13 = vsyncpa [#allocation6], 0 }
   0x2   :  { %14 = vsyncpa [#allocation9], 0 }
   0x3   :  { %15 = vsyncpa [#allocation4], 0 }
   0x4   :  { %16 = vsyncpa [#allocation12], 0  ;;  %s682_s21 = smov [#allocation5]   ;;  %s683_s23 = smov [#allocation2]  }
   0x5   :  { %s35_s22 = sshll.u32 %s682_s21, 4  ;;  %s22_s24 = sshll.u32 %s683_s23, 4  ;;  %s36_s22 = int_to_ptr.vmem [resolvable:$true] %s35_s22  ;;  %s726_s24 = int_to_ptr.vmem [resolvable:$true] %s22_s24 }
   0x6   :  { %s518_s27 = scalar_lea.hbm %s900_s1, 16 }
   0x7   :  { %p519_p0 = scmp.ne.s32.totalorder %s900_s1, %s518_s27  ;;  %p522_p1 = scmp.lt.u32.totalorder %s518_s27, %s900_s1 }
   0x9   :  { %p524_p2 = pnand %p522_p1, %p519_p0 }
   0xb   :  { %527 = shalt.err (!%p524_p2)
}
   0xc   :  { %s528_s8 = scalar_lea.vmem %s36_s22, 16  ;;  %s532_s9 = scalar_lea.vmem %s36_s22, 32 }
   0xd   :  { %p529_p3 = scmp.ne.s32.totalorder %s36_s22, %s528_s8  ;;  %p533_p4 = scmp.lt.s32.totalorder %s36_s22, %s36_s22 }
   0xe   :  { %p534_p5 = scmp.lt.s32.totalorder %s532_s9, %s528_s8 }
  0x10   :  { %p535_p6 = por %p534_p5, %p533_p4 }
  0x12   :  { %p536_p7 = pnand %p535_p6, %p529_p3 }
  0x14   :  { %539 = shalt.err (!%p536_p7)
}
  0x15   :  { %38 = dma.hbm_to_vmem [thread:$0]  %s900_s1, 16, %s36_s22, [#allocation6]  }
  0x16   :  { %s540_s14 = scalar_lea.hbm %s899_s0, 512 }
  0x17   :  { %p541_p8 = scmp.ne.s32.totalorder %s899_s0, %s540_s14  ;;  %p544_p9 = scmp.lt.u32.totalorder %s540_s14, %s899_s0 }
  0x19   :  { %p546_p10 = pnand %p544_p9, %p541_p8 }
  0x1b   :  { %549 = shalt.err (!%p546_p10)
}
  0x1c   :  { %s550_s19 = scalar_lea.vmem %s726_s24, 512  ;;  %p555_p12 = scmp.lt.s32.totalorder %s726_s24, %s726_s24 }
  0x1d   :  { %p551_p11 = scmp.ne.s32.totalorder %s726_s24, %s550_s19  ;;  %p556_p13 = scmp.lt.s32.totalorder %s550_s19, %s550_s19 }
  0x1f   :  { %p557_p0 = por %p556_p13, %p555_p12 }
  0x21   :  { %p558_p1 = pnand %p557_p0, %p551_p11 }
  0x23   :  { %561 = shalt.err (!%p558_p1)
}
  0x24   :  { %s684_s1 = smov 64   ;;  %s685_s20 = smov 4  }
  0x25   :  { %28 = dma.hbm_to_vmem [thread:$0]  %s899_s0, 512, %s726_s24, [#allocation3], %s684_s1, %s684_s1, %s685_s20  }
  0x26   :  { %s686_s23 = smov [#allocation7]   ;;  %s687_s26 = smov [#allocation8]  }
  0x27   :  { %s45_s25 = sshll.u32 %s686_s23, 4  ;;  %s54_s27 = sshll.u32 %s687_s26, 4  ;;  %s46_s25 = int_to_ptr.vmem [resolvable:$true] %s45_s25  ;;  %s760_s27 = int_to_ptr.vmem [resolvable:$true] %s54_s27 }
  0x28   :  { %s562_s30 = scalar_lea.hbm %s901_s2, 16 }
  0x29   :  { %p563_p2 = scmp.ne.s32.totalorder %s901_s2, %s562_s30  ;;  %p566_p3 = scmp.lt.u32.totalorder %s562_s30, %s901_s2 }
  0x2b   :  { %p568_p4 = pnand %p566_p3, %p563_p2 }
  0x2d   :  { %571 = shalt.err (!%p568_p4)
}
  0x2e   :  { %s572_s0 = scalar_lea.vmem %s46_s25, 16  ;;  %s576_s24 = scalar_lea.vmem %s46_s25, 32 }
  0x2f   :  { %p573_p5 = scmp.ne.s32.totalorder %s46_s25, %s572_s0  ;;  %p577_p6 = scmp.lt.s32.totalorder %s46_s25, %s46_s25 }
  0x30   :  { %p578_p7 = scmp.lt.s32.totalorder %s576_s24, %s572_s0 }
  0x32   :  { %p579_p8 = por %p578_p7, %p577_p6 }
  0x34   :  { %p580_p9 = pnand %p579_p8, %p573_p5 }
  0x36   :  { %583 = shalt.err (!%p580_p9)
}
  0x37   :  { %48 = dma.hbm_to_vmem [thread:$0]  %s901_s2, 16, %s46_s25, [#allocation6]  }
  0x38   :  { %s584_s15 = scalar_lea.hbm %s902_s3, 256 }
  0x39   :  { %p585_p10 = scmp.ne.s32.totalorder %s902_s3, %s584_s15  ;;  %p588_p11 = scmp.lt.u32.totalorder %s584_s15, %s902_s3 }
  0x3b   :  { %p590_p12 = pnand %p588_p11, %p585_p10 }
  0x3d   :  { %593 = shalt.err (!%p590_p12)
}
  0x3e   :  { %s594_s21 = scalar_lea.vmem %s760_s27, 256  ;;  %p599_p0 = scmp.lt.s32.totalorder %s760_s27, %s760_s27 }
  0x3f   :  { %p595_p13 = scmp.ne.s32.totalorder %s760_s27, %s594_s21  ;;  %p600_p1 = scmp.lt.s32.totalorder %s594_s21, %s594_s21 }
  0x41   :  { %p601_p2 = por %p600_p1, %p599_p0 }
  0x43   :  { %p602_p3 = pnand %p601_p2, %p595_p13 }
  0x45   :  { %605 = shalt.err (!%p602_p3)
}
  0x46   :  { %60 = dma.hbm_to_vmem [thread:$0]  %s902_s3, 256, %s760_s27, [#allocation9], %s684_s1, %s684_s1, %s685_s20  }
  0x47   :  { %672 = dma.done.wait [#allocation3], 512  }
  0x48   :  { %673 = vsyncadd [#allocation3], 4294966784 }
  0x49   :  { %674 = dma.done.wait [#allocation6], 32  }
  0x4a   :  { %675 = vsyncadd [#allocation6], 4294967264 }
  0x4b   :  { %676 = dma.done.wait [#allocation9], 256  }
  0x4c   :  { %677 = vsyncadd [#allocation9], 4294967040  ;;  %v516_v0 = vld [vmem:[#allocation8] sm:$0xff]   ;;  %v517_v1 = vld [vmem:[#allocation8 + $0x8] sm:$0xff]   ;;  %vm164_vm0 = vcmask 261120   ;;  %vm274_vm9 = vcmask 257024  }
  0x4d   :  { %491 = vmatprep.subr.bf16.mxu0 %v516_v0  ;;  %503 = vmatprep.subr.bf16.mxu1 %v516_v0  ;;  %v467_v2 = vld [vmem:[#allocation2] sm:$0xff]   ;;  %v482_v6 = vld [vmem:[#allocation2 + $0x8] sm:$0xff]   ;;  %v483_v7 = vld [vmem:[#allocation2 + $0x10] sm:$0xff]   ;;  %s688_s3 = smov [#allocation10]  }
  0x4e   :  { %v442_v3 = vld [vmem:[#allocation5] ss:$0 sm:$0xff]  ;;  %492 = vmatpush3.bf16.msra.mxu0 %v516_v0  ;;  %505 = vmatpush3.bf16.msra.mxu1 %v516_v0  ;;  %v468_v4 = vunpack.c.l.bf16 %v467_v2  ;;  %v469_v5 = vunpack.c.h.bf16 %v467_v2  ;;  %v484_v8 = vld [vmem:[#allocation2 + $0x18] sm:$0xff]   ;;  %v443_v9 = vld [vmem:[#allocation7] ss:$0 sm:$0xff]  ;;  %v472_v10 = vunpack.c.l.bf16 %v482_v6  ;;  %v473_v11 = vunpack.c.h.bf16 %v482_v6  ;;  %s401_s23 = sshll.u32 %s688_s3, 4  ;;  %s402_s23 = int_to_ptr.vmem [resolvable:$true] %s401_s23 }
  0x4f   :  { %493 = vmatprep.subr.bf16.mxu0 %v517_v1  ;;  %504 = vmatprep.subr.bf16.mxu1 %v517_v1  ;;  %v476_v12 = vunpack.c.l.bf16 %v483_v7  ;;  %v477_v13 = vunpack.c.h.bf16 %v483_v7  ;;  %v480_v16 = vunpack.c.l.bf16 %v484_v8  ;;  %v481_v23 = vunpack.c.h.bf16 %v484_v8  ;;  %s606_s25 = scalar_lea.vmem %s402_s23, 512  ;;  %p611_p5 = scmp.lt.s32.totalorder %s402_s23, %s402_s23 }
  0x50   :  { %v97_v14 = vmul.f32 %v468_v4, %v442_v3  ;;  %v98_v15 = vmul.f32 %v469_v5, %v442_v3  ;;  %v99_v17 = vmul.f32 %v472_v10, %v442_v3  ;;  %v100_v18 = vmul.f32 %v473_v11, %v442_v3  ;;  %p607_p4 = scmp.ne.s32.totalorder %s402_s23, %s606_s25  ;;  %p612_p6 = scmp.lt.s32.totalorder %s606_s25, %s606_s25 }
  0x51   :  { %v101_v19 = vmul.f32 %v476_v12, %v442_v3  ;;  %v102_v20 = vmul.f32 %v477_v13, %v442_v3  ;;  %v103_v24 = vmul.f32 %v480_v16, %v442_v3  ;;  %v104_v41 = vmul.f32 %v481_v23, %v442_v3 }
  0x52   :  { %494 = vmatpush3.bf16.msra.mxu0 %v517_v1  ;;  %v112_v21 = vadd.f32 %v443_v9, %v97_v14  ;;  %v113_v22 = vadd.f32 %v443_v9, %v98_v15  ;;  %506 = vmatpush3.bf16.msra.mxu1 %v517_v1  ;;  %v114_v25 = vadd.f32 %v443_v9, %v99_v17  ;;  %p613_p7 = por %p612_p6, %p611_p5 }
  0x53   :  { %v115_v26 = vadd.f32 %v443_v9, %v100_v18  ;;  %v116_v27 = vadd.f32 %v443_v9, %v101_v19  ;;  %v117_v28 = vadd.f32 %v443_v9, %v102_v20  ;;  %v118_v42 = vadd.f32 %v443_v9, %v103_v24 }
  0x54   :  { %vm120_vm1 = vcmp.ge.f32.partialorder %v112_v21, 0.0  ;;  %vm121_vm2 = vcmp.ge.f32.partialorder %v113_v22, 0.0  ;;  %v128_v29 = vmul.f32 0.01, %v112_v21  ;;  %v129_v30 = vmul.f32 0.01, %v113_v22  ;;  %p614_p8 = pnand %p613_p7, %p607_p4 }
  0x55   :  { %vm122_vm3 = vcmp.ge.f32.partialorder %v114_v25, 0.0  ;;  %vm123_vm4 = vcmp.ge.f32.partialorder %v115_v26, 0.0  ;;  %v130_v31 = vmul.f32 0.01, %v114_v25  ;;  %v131_v32 = vmul.f32 0.01, %v115_v26 }
  0x56   :  { %v136_v33 = vsel %vm120_vm1, %v112_v21, %v128_v29  ;;  %v137_v34 = vsel %vm121_vm2, %v113_v22, %v129_v30  ;;  %vm124_vm5 = vcmp.ge.f32.partialorder %v116_v27, 0.0  ;;  %vm125_vm6 = vcmp.ge.f32.partialorder %v117_v28, 0.0 }
  0x57   :  { %v144_v35 = vpack.c.bf16 %v137_v34, %v136_v33  ;;  %v138_v36 = vsel %vm122_vm3, %v114_v25, %v130_v31  ;;  %v139_v37 = vsel %vm123_vm4, %v115_v26, %v131_v32  ;;  %v132_v38 = vmul.f32 0.01, %v116_v27 }
  0x58   :  { %v145_v39 = vpack.c.bf16 %v139_v37, %v138_v36  ;;  %v133_v40 = vmul.f32 0.01, %v117_v28  ;;  %v119_v45 = vadd.f32 %v443_v9, %v104_v41  ;;  %vm126_vm7 = vcmp.ge.f32.partialorder %v118_v42, 0.0 }
  0x59   :  { %495 = vmatprep.mubr.msk.bf16.mxu0 %vm164_vm0, %v144_v35  ;;  %v140_v43 = vsel %vm124_vm5, %v116_v27, %v132_v38  ;;  %v134_v46 = vmul.f32 0.01, %v118_v42 }
  0x5a   :  { %496 = vmatmul.mubr.msk.bf16.vlgmr.msra.gmra.mrb[0].mxu0 %vm164_vm0, %v145_v39  ;;  %v141_v44 = vsel %vm125_vm6, %v117_v28, %v133_v40  ;;  %vm127_vm8 = vcmp.ge.f32.partialorder %v119_v45, 0.0  ;;  %v135_v48 = vmul.f32 0.01, %v119_v45 }
  0x5b   :  { %v146_v47 = vpack.c.bf16 %v141_v44, %v140_v43  ;;  %v142_v49 = vsel %vm126_vm7, %v118_v42, %v134_v46 }
  0x5c   :  { %v143_v50 = vsel %vm127_vm8, %v119_v45, %v135_v48 }
  0x5d   :  { %499 = vmatprep.mubr.msk.bf16.mxu1 %vm164_vm0, %v146_v47  ;;  %v147_v51 = vpack.c.bf16 %v143_v50, %v142_v49 }
  0x5f   :  { %500 = vmatmul.mubr.msk.bf16.vlgmr.msra.gmra.mrb[0].mxu1 %vm164_vm0, %v147_v51 }
 0x12d   :  { %v798_v52 = vpop.f32.mrb[0].mxu0 }
 0x12e   :  { %v460_v53 = vpack.c.bf16 %v798_v52, %v798_v52  ;;  %v802_v54 = vpop.f32.mrb[1].mxu0  ;;  %v327_v63 = vsel %vm164_vm0, %v798_v52, 0.0 }
 0x12f   :  { %v458_v55 = vpack.c.bf16 %v802_v54, %v802_v54  ;;  %v806_v56 = vpop.f32.mrb[2].mxu0  ;;  %v324_v59 = vsel %vm164_vm0, %v802_v54, 0.0 }
 0x130   :  { %277 = vst.msk [vmem:[#allocation10 + $0x8] sm:$0xf] %vm274_vm9, %v460_v53  ;;  %v461_v57 = vpack.c.bf16 %v806_v56, %v806_v56  ;;  %v811_v58 = vpop.f32.mrb[3].mxu0  ;;  %v329_v2 = vsel %vm164_vm0, %v806_v56, 0.0 }
 0x131   :  { %275 = vst.msk [vmem:[#allocation10] sm:$0xf] %vm274_vm9, %v458_v55  ;;  %v459_v60 = vpack.c.bf16 %v811_v58, %v811_v58  ;;  %v325_v61 = vsel %vm164_vm0, %v811_v58, 0.0 }
 0x132   :  { %278 = vst.msk [vmem:[#allocation10 + $0xc] sm:$0xf] %vm274_vm9, %v461_v57  ;;  %v326_v62 = vadd.f32 %v325_v61, %v324_v59  ;;  %v824_v1 = vpop.f32.mrb[0].mxu1 }
 0x133   :  { %276 = vst.msk [vmem:[#allocation10 + $0x4] sm:$0xf] %vm274_vm9, %v459_v60  ;;  %v464_v3 = vpack.c.bf16 %v824_v1, %v824_v1  ;;  %v830_v4 = vpop.f32.mrb[1].mxu1  ;;  %v335_v15 = vsel %vm164_vm0, %v824_v1, 0.0 }
 0x134   :  { %v328_v0 = vadd.f32 %v327_v63, %v326_v62  ;;  %v462_v5 = vpack.c.bf16 %v830_v4, %v830_v4  ;;  %v331_v7 = vsel %vm164_vm0, %v830_v4, 0.0  ;;  %v502_v8 = vpop.f32.mrb[2].mxu1 }
 0x135   :  { %281 = vst.msk [vmem:[#allocation10 + $0x18] sm:$0xf] %vm274_vm9, %v464_v3  ;;  %v465_v9 = vpack.c.bf16 %v502_v8, %v502_v8  ;;  %v230_v10 = vpop.f32.mrb[3].mxu1 }
 0x136   :  { %v330_v6 = vadd.f32 %v329_v2, %v328_v0  ;;  %279 = vst.msk [vmem:[#allocation10 + $0x10] sm:$0xf] %vm274_vm9, %v462_v5  ;;  %v463_v12 = vpack.c.bf16 %v230_v10, %v230_v10  ;;  %v333_v13 = vsel %vm164_vm0, %v230_v10, 0.0 }
 0x137   :  { %282 = vst.msk [vmem:[#allocation10 + $0x1c] sm:$0xf] %vm274_vm9, %v465_v9 }
 0x138   :  { %v332_v11 = vadd.f32 %v331_v7, %v330_v6  ;;  %280 = vst.msk [vmem:[#allocation10 + $0x14] sm:$0xf] %vm274_vm9, %v463_v12 }
 0x13a   :  { %v334_v14 = vadd.f32 %v333_v13, %v332_v11 }
 0x13b   :  { %617 = shalt.err (!%p614_p8)
}
 0x13c   :  { %s618_s28 = scalar_lea.hbm %s903_s4, 512 }
 0x13d   :  { %p619_p9 = scmp.ne.s32.totalorder %s903_s4, %s618_s28  ;;  %p622_p10 = scmp.lt.u32.totalorder %s618_s28, %s903_s4 }
 0x13f   :  { %p624_p11 = pnand %p622_p10, %p619_p9 }
 0x141   :  { %627 = shalt.err (!%p624_p11)
}
 0x142   :  { %407 = dma.vmem_to_hbm [thread:$0]  %s402_s23, 512, %s903_s4, [#allocation4], %s684_s1, %s684_s1, %s685_s20   ;;  %v336_v16 = vadd.f32 %v335_v15, %v334_v14  ;;  %v337_v17 = vsel %vm164_vm0, %v502_v8, 0.0  ;;  %vm364_vm10 = vcmask 253952  }
 0x143   :  { %s689_s0 = smov [#allocation11]  }
 0x144   :  { %v338_v18 = vadd.f32 %v337_v17, %v336_v16  ;;  %s414_s24 = sshll.u32 %s689_s0, 4  ;;  %s415_s24 = int_to_ptr.vmem [resolvable:$true] %s414_s24 }
 0x145   :  { %s628_s11 = scalar_lea.vmem %s415_s24, 16  ;;  %s632_s4 = scalar_lea.vmem %s415_s24, 32 }
 0x146   :  { %v339_v19 = vrot.slane %v338_v18, 4  ;;  %p629_p12 = scmp.ne.s32.totalorder %s415_s24, %s628_s11  ;;  %p633_p13 = scmp.lt.s32.totalorder %s415_s24, %s415_s24 }
 0x147   :  { %p634_p0 = scmp.lt.s32.totalorder %s632_s4, %s628_s11 }
 0x148   :  { %v340_v20 = vadd.f32 %v339_v19, %v338_v18 }
 0x149   :  { %p635_p1 = por %p634_p0, %p633_p13 }
 0x14a   :  { %v341_v21 = vrot.slane %v340_v20, 2 }
 0x14b   :  { %p636_p2 = pnand %p635_p1, %p629_p12 }
 0x14c   :  { %v342_v22 = vadd.f32 %v341_v21, %v340_v20 }
 0x14e   :  { %v343_v23 = vrot.slane %v342_v22, 1 }
 0x150   :  { %v344_v24 = vadd.f32 %v343_v23, %v342_v22 }
 0x152   :  { %v347_v25 = vmul.f32 0.015625, %v344_v24  ;;  %365 = vst.msk [vmem:[#allocation11] sm:$0x1] %vm364_vm10, %v344_v24 }
 0x153   :  { %639 = shalt.err (!%p636_p2)
}
 0x154   :  { %s640_s12 = scalar_lea.hbm %s904_s5, 16 }
 0x155   :  { %p641_p3 = scmp.ne.s32.totalorder %s904_s5, %s640_s12  ;;  %p644_p4 = scmp.lt.u32.totalorder %s640_s12, %s904_s5 }
 0x157   :  { %p646_p5 = pnand %p644_p4, %p641_p3 }
 0x159   :  { %649 = shalt.err (!%p646_p5)
}
 0x15a   :  { %417 = dma.vmem_to_hbm [thread:$0]  %s415_s24, 16, %s904_s5, [#allocation12]   ;;  %v348_v26 = vsub.f32 %v802_v54, %v347_v25  ;;  %v349_v27 = vsub.f32 %v811_v58, %v347_v25  ;;  %v350_v28 = vsub.f32 %v798_v52, %v347_v25  ;;  %v351_v29 = vsub.f32 %v806_v56, %v347_v25 }
 0x15b   :  { %v352_v30 = vsub.f32 %v830_v4, %v347_v25  ;;  %v353_v31 = vsub.f32 %v230_v10, %v347_v25  ;;  %v354_v32 = vsub.f32 %v824_v1, %v347_v25  ;;  %v355_v33 = vsub.f32 %v502_v8, %v347_v25  ;;  %s690_s5 = smov [#allocation13]  }
 0x15c   :  { %v366_v34 = vmul.f32 %v348_v26, %v348_v26  ;;  %v367_v35 = vmul.f32 %v349_v27, %v349_v27  ;;  %v368_v36 = vmul.f32 %v350_v28, %v350_v28  ;;  %v369_v37 = vmul.f32 %v351_v29, %v351_v29  ;;  %s424_s19 = sshll.u32 %s690_s5, 4  ;;  %s425_s19 = int_to_ptr.vmem [resolvable:$true] %s424_s19 }
 0x15d   :  { %v370_v41 = vmul.f32 %v352_v30, %v352_v30  ;;  %v371_v44 = vmul.f32 %v353_v31, %v353_v31  ;;  %v372_v47 = vmul.f32 %v354_v32, %v354_v32  ;;  %v373_v50 = vmul.f32 %v355_v33, %v355_v33  ;;  %s650_s21 = scalar_lea.vmem %s425_s19, 16  ;;  %s654_s2 = scalar_lea.vmem %s425_s19, 32 }
 0x15e   :  { %v374_v38 = vsel %vm164_vm0, %v366_v34, 0.0  ;;  %v375_v39 = vsel %vm164_vm0, %v367_v35, 0.0  ;;  %v377_v42 = vsel %vm164_vm0, %v368_v36, 0.0  ;;  %v379_v45 = vsel %vm164_vm0, %v369_v37, 0.0  ;;  %p651_p6 = scmp.ne.s32.totalorder %s425_s19, %s650_s21  ;;  %p655_p7 = scmp.lt.s32.totalorder %s425_s19, %s425_s19 }
 0x15f   :  { %v376_v40 = vadd.f32 %v375_v39, %v374_v38  ;;  %v381_v48 = vsel %vm164_vm0, %v370_v41, 0.0  ;;  %v383_v51 = vsel %vm164_vm0, %v371_v44, 0.0  ;;  %v385_v53 = vsel %vm164_vm0, %v372_v47, 0.0  ;;  %p656_p8 = scmp.lt.s32.totalorder %s654_s2, %s650_s21 }
 0x160   :  { %v387_v55 = vsel %vm164_vm0, %v373_v50, 0.0 }
 0x161   :  { %v378_v43 = vadd.f32 %v377_v42, %v376_v40  ;;  %p657_p9 = por %p656_p8, %p655_p7 }
 0x163   :  { %v380_v46 = vadd.f32 %v379_v45, %v378_v43  ;;  %p658_p10 = pnand %p657_p9, %p651_p6 }
 0x165   :  { %v382_v49 = vadd.f32 %v381_v48, %v380_v46 }
 0x167   :  { %v384_v52 = vadd.f32 %v383_v51, %v382_v49 }
 0x169   :  { %v386_v54 = vadd.f32 %v385_v53, %v384_v52 }
 0x16b   :  { %v388_v56 = vadd.f32 %v387_v55, %v386_v54 }
 0x16d   :  { %v389_v57 = vrot.slane %v388_v56, 4 }
 0x16f   :  { %v390_v58 = vadd.f32 %v389_v57, %v388_v56 }
 0x171   :  { %v391_v59 = vrot.slane %v390_v58, 2 }
 0x173   :  { %v392_v60 = vadd.f32 %v391_v59, %v390_v58 }
 0x175   :  { %v393_v61 = vrot.slane %v392_v60, 1 }
 0x177   :  { %v394_v62 = vadd.f32 %v393_v61, %v392_v60 }
 0x179   :  { %395 = vst.msk [vmem:[#allocation13] sm:$0x1] %vm364_vm10, %v394_v62 }
 0x17a   :  { %661 = shalt.err (!%p658_p10)
}
 0x17b   :  { %s662_s23 = scalar_lea.hbm %s905_s6, 16 }
 0x17c   :  { %p663_p11 = scmp.ne.s32.totalorder %s905_s6, %s662_s23  ;;  %p666_p12 = scmp.lt.u32.totalorder %s662_s23, %s905_s6 }
 0x17e   :  { %p668_p13 = pnand %p666_p12, %p663_p11 }
 0x180   :  { %671 = shalt.err (!%p668_p13)
}
 0x181   :  { %427 = dma.vmem_to_hbm [thread:$0]  %s425_s19, 16, %s905_s6, [#allocation12]  }
 0x182   :  { %678 = dma.done.wait [#allocation4], 512  }
 0x183   :  { %679 = vsyncadd [#allocation4], 4294966784 }
 0x184   :  { %680 = dma.done.wait [#allocation12], 32  }
 0x185   :  { %681 = vsyncadd [#allocation12], 4294967264 }
 0x186   :  { %437 = vsyncpa [#allocation3], 1 }
 0x187   :  { %438 = vsyncpa [#allocation6], 1 }
 0x188   :  { %439 = vsyncpa [#allocation9], 1 }
 0x189   :  { %440 = vsyncpa [#allocation4], 1 }
 0x18a   :  { %441 = vsyncpa [#allocation12], 1 }

// kernel: shared_mlp_forward.5
= control target key start
LH: loop header
LB: loop body
LE: loop exit
PB: predicated region body
PF: predicated region fallthrough
CT: control target
= control target key end

     0   :  { %9 = vsyncpa [#allocation3], 0  ;;  %s570_s0 = inlined_call_operand.hbm [shape: bf16[64,32], index: 0, kind: input, shape index: {}]   ;;  %s571_s1 = inlined_call_operand.hbm [shape: f32[1,32], index: 1, kind: input, shape index: {}]   ;;  %s572_s2 = inlined_call_operand.hbm [shape: f32[1,32], index: 2, kind: input, shape index: {}]   ;;  %s573_s3 = inlined_call_operand.hbm [shape: bf16[32,8], index: 3, kind: input, shape index: {}]   ;;  %s574_s4 = inlined_call_operand.hbm [shape: f32[64,8], index: 4, kind: output, shape index: {}]  }
   0x1   :  { %10 = vsyncpa [#allocation6], 0 }
   0x2   :  { %11 = vsyncpa [#allocation9], 0 }
   0x3   :  { %12 = vsyncpa [#allocation4], 0  ;;  %s444_s15 = smov [#allocation5]   ;;  %s445_s17 = smov [#allocation2]  }
   0x4   :  { %s31_s16 = sshll.u32 %s444_s15, 4  ;;  %s18_s18 = sshll.u32 %s445_s17, 4  ;;  %s32_s16 = int_to_ptr.vmem [resolvable:$true] %s31_s16  ;;  %s478_s18 = int_to_ptr.vmem [resolvable:$true] %s18_s18 }
   0x5   :  { %s326_s21 = scalar_lea.hbm %s571_s1, 16 }
   0x6   :  { %p327_p0 = scmp.ne.s32.totalorder %s571_s1, %s326_s21  ;;  %p330_p1 = scmp.lt.u32.totalorder %s326_s21, %s571_s1 }
   0x8   :  { %p332_p2 = pnand %p330_p1, %p327_p0 }
   0xa   :  { %335 = shalt.err (!%p332_p2)
}
   0xb   :  { %s336_s26 = scalar_lea.vmem %s32_s16, 16  ;;  %s340_s27 = scalar_lea.vmem %s32_s16, 32 }
   0xc   :  { %p337_p3 = scmp.ne.s32.totalorder %s32_s16, %s336_s26  ;;  %p341_p4 = scmp.lt.s32.totalorder %s32_s16, %s32_s16 }
   0xd   :  { %p342_p5 = scmp.lt.s32.totalorder %s340_s27, %s336_s26 }
   0xf   :  { %p343_p6 = por %p342_p5, %p341_p4 }
  0x11   :  { %p344_p7 = pnand %p343_p6, %p337_p3 }
  0x13   :  { %347 = shalt.err (!%p344_p7)
}
  0x14   :  { %34 = dma.hbm_to_vmem [thread:$0]  %s571_s1, 16, %s32_s16, [#allocation6]  }
  0x15   :  { %s348_s6 = scalar_lea.hbm %s570_s0, 512 }
  0x16   :  { %p349_p8 = scmp.ne.s32.totalorder %s570_s0, %s348_s6  ;;  %p352_p9 = scmp.lt.u32.totalorder %s348_s6, %s570_s0 }
  0x18   :  { %p354_p10 = pnand %p352_p9, %p349_p8 }
  0x1a   :  { %357 = shalt.err (!%p354_p10)
}
  0x1b   :  { %s358_s11 = scalar_lea.vmem %s478_s18, 512  ;;  %p363_p12 = scmp.lt.s32.totalorder %s478_s18, %s478_s18 }
  0x1c   :  { %p359_p11 = scmp.ne.s32.totalorder %s478_s18, %s358_s11  ;;  %p364_p13 = scmp.lt.s32.totalorder %s358_s11, %s358_s11 }
  0x1e   :  { %p365_p0 = por %p364_p13, %p363_p12 }
  0x20   :  { %p366_p1 = pnand %p365_p0, %p359_p11 }
  0x22   :  { %369 = shalt.err (!%p366_p1)
}
  0x23   :  { %s446_s1 = smov 64   ;;  %s447_s12 = smov 4  }
  0x24   :  { %24 = dma.hbm_to_vmem [thread:$0]  %s570_s0, 512, %s478_s18, [#allocation3], %s446_s1, %s446_s1, %s447_s12  }
  0x25   :  { %s448_s15 = smov [#allocation7]   ;;  %s449_s17 = smov [#allocation8]  }
  0x26   :  { %s41_s16 = sshll.u32 %s448_s15, 4  ;;  %s50_s19 = sshll.u32 %s449_s17, 4  ;;  %s42_s16 = int_to_ptr.vmem [resolvable:$true] %s41_s16  ;;  %s512_s19 = int_to_ptr.vmem [resolvable:$true] %s50_s19 }
  0x27   :  { %s370_s22 = scalar_lea.hbm %s572_s2, 16 }
  0x28   :  { %p371_p2 = scmp.ne.s32.totalorder %s572_s2, %s370_s22  ;;  %p374_p3 = scmp.lt.u32.totalorder %s370_s22, %s572_s2 }
  0x2a   :  { %p376_p4 = pnand %p374_p3, %p371_p2 }
  0x2c   :  { %379 = shalt.err (!%p376_p4)
}
  0x2d   :  { %s380_s0 = scalar_lea.vmem %s42_s16, 16  ;;  %s384_s18 = scalar_lea.vmem %s42_s16, 32 }
  0x2e   :  { %p381_p5 = scmp.ne.s32.totalorder %s42_s16, %s380_s0  ;;  %p385_p6 = scmp.lt.s32.totalorder %s42_s16, %s42_s16 }
  0x2f   :  { %p386_p7 = scmp.lt.s32.totalorder %s384_s18, %s380_s0 }
  0x31   :  { %p387_p8 = por %p386_p7, %p385_p6 }
  0x33   :  { %p388_p9 = pnand %p387_p8, %p381_p5 }
  0x35   :  { %391 = shalt.err (!%p388_p9)
}
  0x36   :  { %44 = dma.hbm_to_vmem [thread:$0]  %s572_s2, 16, %s42_s16, [#allocation6]  }
  0x37   :  { %s392_s5 = scalar_lea.hbm %s573_s3, 256 }
  0x38   :  { %p393_p10 = scmp.ne.s32.totalorder %s573_s3, %s392_s5  ;;  %p396_p11 = scmp.lt.u32.totalorder %s392_s5, %s573_s3 }
  0x3a   :  { %p398_p12 = pnand %p396_p11, %p393_p10 }
  0x3c   :  { %401 = shalt.err (!%p398_p12)
}
  0x3d   :  { %s402_s10 = scalar_lea.vmem %s512_s19, 256  ;;  %p407_p0 = scmp.lt.s32.totalorder %s512_s19, %s512_s19 }
  0x3e   :  { %p403_p13 = scmp.ne.s32.totalorder %s512_s19, %s402_s10  ;;  %p408_p1 = scmp.lt.s32.totalorder %s402_s10, %s402_s10 }
  0x40   :  { %p409_p2 = por %p408_p1, %p407_p0 }
  0x42   :  { %p410_p3 = pnand %p409_p2, %p403_p13 }
  0x44   :  { %413 = shalt.err (!%p410_p3)
}
  0x45   :  { %56 = dma.hbm_to_vmem [thread:$0]  %s573_s3, 256, %s512_s19, [#allocation9], %s446_s1, %s446_s1, %s447_s12  }
  0x46   :  { %436 = dma.done.wait [#allocation3], 512  }
  0x47   :  { %437 = vsyncadd [#allocation3], 4294966784 }
  0x48   :  { %438 = dma.done.wait [#allocation6], 32  }
  0x49   :  { %439 = vsyncadd [#allocation6], 4294967264 }
  0x4a   :  { %440 = dma.done.wait [#allocation9], 256  }
  0x4b   :  { %441 = vsyncadd [#allocation9], 4294967040  ;;  %v324_v0 = vld [vmem:[#allocation8] sm:$0xff]   ;;  %v325_v1 = vld [vmem:[#allocation8 + $0x8] sm:$0xff]   ;;  %vm160_vm0 = vcmask 261120   ;;  %vm238_vm9 = vcmask 64512  }
  0x4c   :  { %299 = vmatprep.subr.bf16.mxu0 %v324_v0  ;;  %311 = vmatprep.subr.bf16.mxu1 %v324_v0  ;;  %v275_v2 = vld [vmem:[#allocation2] sm:$0xff]   ;;  %v291_v6 = vld [vmem:[#allocation2 + $0x10] sm:$0xff]   ;;  %v290_v7 = vld [vmem:[#allocation2 + $0x8] sm:$0xff]   ;;  %s450_s3 = smov [#allocation10]  }
  0x4d   :  { %v266_v3 = vld [vmem:[#allocation5] ss:$0 sm:$0xff]  ;;  %300 = vmatpush3.bf16.msra.mxu0 %v324_v0  ;;  %313 = vmatpush3.bf16.msra.mxu1 %v324_v0  ;;  %v276_v4 = vunpack.c.l.bf16 %v275_v2  ;;  %v277_v5 = vunpack.c.h.bf16 %v275_v2  ;;  %v292_v8 = vld [vmem:[#allocation2 + $0x18] sm:$0xff]   ;;  %v267_v9 = vld [vmem:[#allocation7] ss:$0 sm:$0xff]  ;;  %v284_v10 = vunpack.c.l.bf16 %v291_v6  ;;  %v285_v11 = vunpack.c.h.bf16 %v291_v6  ;;  %s252_s1 = sshll.u32 %s450_s3, 4  ;;  %s253_s1 = int_to_ptr.vmem [resolvable:$true] %s252_s1 }
  0x4e   :  { %301 = vmatprep.subr.bf16.mxu0 %v325_v1  ;;  %312 = vmatprep.subr.bf16.mxu1 %v325_v1  ;;  %v280_v12 = vunpack.c.l.bf16 %v290_v7  ;;  %v281_v13 = vunpack.c.h.bf16 %v290_v7  ;;  %v288_v16 = vunpack.c.l.bf16 %v292_v8  ;;  %v289_v23 = vunpack.c.h.bf16 %v292_v8  ;;  %s414_s12 = scalar_lea.vmem %s253_s1, 1024  ;;  %p419_p5 = scmp.lt.s32.totalorder %s253_s1, %s253_s1 }
  0x4f   :  { %v93_v14 = vmul.f32 %v276_v4, %v266_v3  ;;  %v94_v15 = vmul.f32 %v277_v5, %v266_v3  ;;  %v97_v17 = vmul.f32 %v284_v10, %v266_v3  ;;  %v98_v18 = vmul.f32 %v285_v11, %v266_v3  ;;  %p415_p4 = scmp.ne.s32.totalorder %s253_s1, %s414_s12  ;;  %p420_p6 = scmp.lt.s32.totalorder %s414_s12, %s414_s12 }
  0x50   :  { %v95_v19 = vmul.f32 %v280_v12, %v266_v3  ;;  %v96_v20 = vmul.f32 %v281_v13, %v266_v3  ;;  %v99_v24 = vmul.f32 %v288_v16, %v266_v3  ;;  %v100_v41 = vmul.f32 %v289_v23, %v266_v3 }
  0x51   :  { %302 = vmatpush3.bf16.msra.mxu0 %v325_v1  ;;  %314 = vmatpush3.bf16.msra.mxu1 %v325_v1  ;;  %v108_v21 = vadd.f32 %v267_v9, %v93_v14  ;;  %v109_v22 = vadd.f32 %v267_v9, %v94_v15  ;;  %v112_v25 = vadd.f32 %v267_v9, %v97_v17  ;;  %p421_p7 = por %p420_p6, %p419_p5 }
  0x52   :  { %v113_v26 = vadd.f32 %v267_v9, %v98_v18  ;;  %v110_v27 = vadd.f32 %v267_v9, %v95_v19  ;;  %v111_v28 = vadd.f32 %v267_v9, %v96_v20  ;;  %v114_v42 = vadd.f32 %v267_v9, %v99_v24 }
  0x53   :  { %vm116_vm1 = vcmp.ge.f32.partialorder %v108_v21, 0.0  ;;  %vm117_vm2 = vcmp.ge.f32.partialorder %v109_v22, 0.0  ;;  %v124_v29 = vmul.f32 0.01, %v108_v21  ;;  %v125_v30 = vmul.f32 0.01, %v109_v22  ;;  %p422_p8 = pnand %p421_p7, %p415_p4 }
  0x54   :  { %vm120_vm3 = vcmp.ge.f32.partialorder %v112_v25, 0.0  ;;  %vm121_vm4 = vcmp.ge.f32.partialorder %v113_v26, 0.0  ;;  %v128_v31 = vmul.f32 0.01, %v112_v25  ;;  %v129_v32 = vmul.f32 0.01, %v113_v26 }
  0x55   :  { %v132_v33 = vsel %vm116_vm1, %v108_v21, %v124_v29  ;;  %v133_v34 = vsel %vm117_vm2, %v109_v22, %v125_v30  ;;  %vm118_vm5 = vcmp.ge.f32.partialorder %v110_v27, 0.0  ;;  %vm119_vm6 = vcmp.ge.f32.partialorder %v111_v28, 0.0 }
  0x56   :  { %v140_v35 = vpack.c.bf16 %v133_v34, %v132_v33  ;;  %v136_v36 = vsel %vm120_vm3, %v112_v25, %v128_v31  ;;  %v137_v37 = vsel %vm121_vm4, %v113_v26, %v129_v32  ;;  %v126_v38 = vmul.f32 0.01, %v110_v27 }
  0x57   :  { %v142_v39 = vpack.c.bf16 %v137_v37, %v136_v36  ;;  %v127_v40 = vmul.f32 0.01, %v111_v28  ;;  %v115_v45 = vadd.f32 %v267_v9, %v100_v41  ;;  %vm122_vm7 = vcmp.ge.f32.partialorder %v114_v42, 0.0 }
  0x58   :  { %303 = vmatprep.mubr.msk.bf16.mxu0 %vm160_vm0, %v140_v35  ;;  %v134_v43 = vsel %vm118_vm5, %v110_v27, %v126_v38  ;;  %v130_v46 = vmul.f32 0.01, %v114_v42 }
  0x59   :  { %307 = vmatprep.mubr.msk.bf16.mxu1 %vm160_vm0, %v142_v39  ;;  %v135_v44 = vsel %vm119_vm6, %v111_v28, %v127_v40  ;;  %vm123_vm8 = vcmp.ge.f32.partialorder %v115_v45, 0.0  ;;  %v131_v48 = vmul.f32 0.01, %v115_v45 }
  0x5a   :  { %v141_v47 = vpack.c.bf16 %v135_v44, %v134_v43  ;;  %v138_v49 = vsel %vm122_vm7, %v114_v42, %v130_v46 }
  0x5b   :  { %v139_v50 = vsel %vm123_vm8, %v115_v45, %v131_v48 }
  0x5c   :  { %304 = vmatmul.mubr.msk.bf16.vlgmr.msra.gmra.mrb[0].mxu0 %vm160_vm0, %v141_v47  ;;  %v143_v51 = vpack.c.bf16 %v139_v50, %v138_v49 }
  0x5e   :  { %308 = vmatmul.mubr.msk.bf16.vlgmr.msra.gmra.mrb[0].mxu1 %vm160_vm0, %v143_v51 }
 0x12f   :  { %v305_v52 = vpop.f32.mrb[0].mxu0 }
 0x130   :  { %241 = vst.msk [vmem:[#allocation10 + $0x10] sm:$0xff] %vm238_vm9, %v305_v52  ;;  %v207_v53 = vpop.f32.mrb[1].mxu0 }
 0x131   :  { %239 = vst.msk [vmem:[#allocation10] sm:$0xff] %vm238_vm9, %v207_v53  ;;  %v306_v54 = vpop.f32.mrb[2].mxu0  ;;  %v309_v56 = vpop.f32.mrb[0].mxu1 }
 0x132   :  { %242 = vst.msk [vmem:[#allocation10 + $0x18] sm:$0xff] %vm238_vm9, %v306_v54  ;;  %v210_v55 = vpop.f32.mrb[3].mxu0  ;;  %245 = vst.msk [vmem:[#allocation10 + $0x30] sm:$0xff] %vm238_vm9, %v309_v56  ;;  %v223_v57 = vpop.f32.mrb[1].mxu1 }
 0x133   :  { %240 = vst.msk [vmem:[#allocation10 + $0x8] sm:$0xff] %vm238_vm9, %v210_v55  ;;  %243 = vst.msk [vmem:[#allocation10 + $0x20] sm:$0xff] %vm238_vm9, %v223_v57  ;;  %v310_v58 = vpop.f32.mrb[2].mxu1 }
 0x134   :  { %246 = vst.msk [vmem:[#allocation10 + $0x38] sm:$0xff] %vm238_vm9, %v310_v58  ;;  %v226_v59 = vpop.f32.mrb[3].mxu1 }
 0x135   :  { %244 = vst.msk [vmem:[#allocation10 + $0x28] sm:$0xff] %vm238_vm9, %v226_v59 }
 0x136   :  { %425 = shalt.err (!%p422_p8)
}
 0x137   :  { %s426_s15 = scalar_lea.hbm %s574_s4, 1024 }
 0x138   :  { %p427_p9 = scmp.ne.s32.totalorder %s574_s4, %s426_s15  ;;  %p430_p10 = scmp.lt.u32.totalorder %s426_s15, %s574_s4 }
 0x13a   :  { %p432_p11 = pnand %p430_p10, %p427_p9 }
 0x13c   :  { %435 = shalt.err (!%p432_p11)
}
 0x13d   :  { %s451_s21 = smov 128   ;;  %s452_s22 = smov 8  }
 0x13e   :  { %258 = dma.vmem_to_hbm [thread:$0]  %s253_s1, 1024, %s574_s4, [#allocation4], %s451_s21, %s451_s21, %s452_s22  }
 0x13f   :  { %442 = dma.done.wait [#allocation4], 1024  }
 0x140   :  { %443 = vsyncadd [#allocation4], 4294966272 }
 0x141   :  { %262 = vsyncpa [#allocation3], 1 }
 0x142   :  { %263 = vsyncpa [#allocation6], 1 }
 0x143   :  { %264 = vsyncpa [#allocation9], 1 }
 0x144   :  { %265 = vsyncpa [#allocation4], 1 }

</bundles_post_ra>
